<compile_context>
chip_gen: v7x
topology: tpu7x:2x2x1
jax: 0.10.0
libtpu: 0.0.40
codegen_flags: <defaults>
</compile_context>

<pallas_src>
import jax
import jax.numpy as jnp
from jax import lax
from jax.experimental import pallas as pl
from jax.experimental.pallas import tpu as pltpu

OUT_LANES = 128    # lane-dense output width (unmasked vector stores)
N_SCALARS = 16     # packed parameter scalars in SMEM (14 used, padded to 16)

# SMEM scalar packing layout:
#   [0..3]   a00 a01 a10 a11
#   [4..7]   b00 b01 b10 b11
#   [8..9]   x0_0 x0_1
#   [10..11] cA0 cA1  = x0 @ A.T  (folded A(x - x0) constant)
#   [12..13] cB0 cB1  = x0 @ B.T  (folded B(x + x0) constant)
_SCALAR_NAMES = ("a00", "a01", "a10", "a11",
                 "b00", "b01", "b10", "b11",
                 "x0_0", "x0_1", "cA0", "cA1", "cB0", "cB1")


def _read_scalars(p_ref):
    """Hoistable SMEM scalar reads (call once, outside any loop)."""
    return {name: p_ref[i] for i, name in enumerate(_SCALAR_NAMES)}


def _rhs(x0c, x1c, p):
    """dx/dt as scalar-coefficient linear combinations.

    x0c, x1c : (B, 1) f32 state components (VPU vregs)
    p        : dict of scalars read from SMEM
    All VALU ops plus exactly one EUP sigmoid per evaluation.
    """
    g = x0c * p["x0_0"] + x1c * p["x0_1"]                  # <x, x0>
    s = jax.nn.sigmoid(g)                                  # sigmoid(-g) == 1 - s
    ra0 = p["a00"] * x0c + p["a01"] * x1c - p["cA0"]       # A(x - x0), comp 0
    ra1 = p["a10"] * x0c + p["a11"] * x1c - p["cA1"]       # A(x - x0), comp 1
    rb0 = p["b00"] * x0c + p["b01"] * x1c + p["cB0"]       # B(x + x0), comp 0
    rb1 = p["b10"] * x0c + p["b11"] * x1c + p["cB1"]       # B(x + x0), comp 1
    # s*ra + (1-s)*rb  ==  rb + s*(ra - rb)   (saves a mul + (1-s) broadcast)
    d0 = rb0 + s * (ra0 - rb0)
    d1 = rb1 + s * (ra1 - rb1)
    return d0, d1


def _lane_dense(d0, d1, batch):
    """Place the two result components in lanes 0/1 of a (batch, 128) tile."""
    lane = lax.broadcasted_iota(jnp.int32, (batch, OUT_LANES), 1)
    return jnp.where(lane == 0, d0, jnp.where(lane == 1, d1, 0.0))


def _forward_kernel(x_ref, p_ref, o_ref):
    """Single RHS evaluation (== TestODEF.forward).

    x_ref : (batch, 2) f32 in VMEM
    p_ref : (16,)      f32 in SMEM (packed scalars)
    o_ref : (batch, 128) f32; lanes 0-1 = dx/dt
    """
    p = _read_scalars(p_ref)
    d0, d1 = _rhs(x_ref[:, 0:1], x_ref[:, 1:2], p)
    o_ref[...] = _lane_dense(d0, d1, x_ref.shape[0])


def _make_euler_kernel(n_steps, dt):
    """Fused forward-Euler rollout: n_steps RHS evaluations in one pallas_call,
    state resident in two (batch, 1) vregs, loop fully unrolled."""
    def kernel(x_ref, p_ref, o_ref):
        p = _read_scalars(p_ref)          # hoisted SMEM reads
        batch = x_ref.shape[0]

        def body(_, carry):
            x0c, x1c = carry
            d0, d1 = _rhs(x0c, x1c, p)
            return (x0c + dt * d0, x1c + dt * d1)

        x0c, x1c = lax.fori_loop(
            0, n_steps, body, (x_ref[:, 0:1], x_ref[:, 1:2]), unroll=True)
        o_ref[...] = _lane_dense(x0c, x1c, batch)

    return kernel


def make_test_odef(A, B, x0, *, dt=0.05, n_steps=32):
    """Build (forward, integrate) with all parameter packing hoisted out of the
    per-call path.  `forward(x, t)` matches TestODEF.forward; `integrate(x)`
    runs n_steps of forward Euler fused inside one pallas_call."""
    A = jnp.asarray(A, jnp.float32)
    B = jnp.asarray(B, jnp.float32)
    x0 = jnp.asarray(x0, jnp.float32).reshape(1, 2)

    # ---- packed scalar parameters (built once, reused every call) ----
    cA = (x0 @ A.T).reshape(2)            # folded A(x - x0) constant
    cB = (x0 @ B.T).reshape(2)            # folded B(x + x0) constant
    params = jnp.zeros((N_SCALARS,), jnp.float32)
    params = (params.at[0:4].set(A.reshape(-1))
                    .at[4:8].set(B.reshape(-1))
                    .at[8:10].set(x0.reshape(-1))
                    .at[10:12].set(cA)
                    .at[12:14].set(cB))

    vmem = pl.BlockSpec(memory_space=pltpu.MemorySpace.VMEM)
    smem = pl.BlockSpec(memory_space=pltpu.MemorySpace.SMEM)

    @jax.jit
    def forward(x, t):
        del t  # forward() never uses t
        batch = x.shape[0]
        call = pl.pallas_call(
            _forward_kernel,
            out_shape=jax.ShapeDtypeStruct((batch, OUT_LANES), jnp.float32),
            in_specs=[vmem, smem],
            out_specs=vmem,
        )
        return call(x.astype(jnp.float32), params)[:, :2]

    @jax.jit
    def integrate(x):
        batch = x.shape[0]
        call = pl.pallas_call(
            _make_euler_kernel(int(n_steps), float(dt)),
            out_shape=jax.ShapeDtypeStruct((batch, OUT_LANES), jnp.float32),
            in_specs=[vmem, smem],
            out_specs=vmem,
        )
        return call(x.astype(jnp.float32), params)[:, :2]

    return forward, integrate


def test_odef_reference(x, t, A, B, x0):
    """Plain-JAX reference (mirrors the PyTorch math for batch=1)."""
    del t
    xtx0 = jnp.sum(x * x0, axis=1, keepdims=True)
    return (jax.nn.sigmoid(xtx0) * ((x - x0) @ A.T)
            + jax.nn.sigmoid(-xtx0) * ((x + x0) @ B.T))


if __name__ == "__main__":
    # Deterministic parameters (same constants as the original CNF tutorial).
    A = jnp.array([[-0.1, -1.0], [1.0, -0.1]], dtype=jnp.float32)
    B = jnp.array([[0.2, 1.0], [-1.0, 0.2]], dtype=jnp.float32)
    x0 = jnp.array([[-1.0, 0.0]], dtype=jnp.float32)

    key = jax.random.PRNGKey(0)
    batch = 1      # only batch for which the literal PyTorch broadcast is well-defined
    x = jax.random.normal(key, (batch, 2), dtype=jnp.float32)
    t = jnp.float32(0.0)

    dt, n_steps = 0.05, 32
    forward, integrate = make_test_odef(A, B, x0, dt=dt, n_steps=n_steps)

    # single RHS evaluation (== TestODEF.forward)
    out = jax.block_until_ready(forward(x, t))
    ref = test_odef_reference(x, t, A, B, x0)
    assert out.shape == (batch, 2), out.shape
    assert jnp.allclose(out, ref, atol=1e-5, rtol=1e-5), (out, ref)

    # fused n-step Euler rollout (amortized launch overhead, no MXU on the path)
    traj = jax.block_until_ready(integrate(x))
    z = x
    for _ in range(n_steps):
        z = z + dt * test_odef_reference(z, t, A, B, x0)
    assert traj.shape == (batch, 2), traj.shape
    assert jnp.allclose(traj, z, atol=1e-4, rtol=1e-4), (traj, z)

    print("KERNEL_OK")
</pallas_src>

<mosaic_0001>
module attributes {stable_mosaic.version = 11 : i64} {
  func.func @_forward_kernel(%arg0: memref<1x2xf32, #tpu.memory_space<vmem>>, %arg1: memref<16xf32, #tpu.memory_space<smem>>, %arg2: memref<1x128xf32, #tpu.memory_space<vmem>>) attributes {dimension_semantics = [], scalar_prefetch = 0 : i64, scratch_operands = 0 : i64, tpu.core_type = #tpu.core_type<tc>} {
    %c0 = arith.constant 0 : index
    %0 = memref.load %arg1[%c0] : memref<16xf32, #tpu.memory_space<smem>>
    %c1 = arith.constant 1 : index
    %1 = memref.load %arg1[%c1] : memref<16xf32, #tpu.memory_space<smem>>
    %c2 = arith.constant 2 : index
    %2 = memref.load %arg1[%c2] : memref<16xf32, #tpu.memory_space<smem>>
    %c3 = arith.constant 3 : index
    %3 = memref.load %arg1[%c3] : memref<16xf32, #tpu.memory_space<smem>>
    %c4 = arith.constant 4 : index
    %4 = memref.load %arg1[%c4] : memref<16xf32, #tpu.memory_space<smem>>
    %c5 = arith.constant 5 : index
    %5 = memref.load %arg1[%c5] : memref<16xf32, #tpu.memory_space<smem>>
    %c6 = arith.constant 6 : index
    %6 = memref.load %arg1[%c6] : memref<16xf32, #tpu.memory_space<smem>>
    %c7 = arith.constant 7 : index
    %7 = memref.load %arg1[%c7] : memref<16xf32, #tpu.memory_space<smem>>
    %c8 = arith.constant 8 : index
    %8 = memref.load %arg1[%c8] : memref<16xf32, #tpu.memory_space<smem>>
    %c9 = arith.constant 9 : index
    %9 = memref.load %arg1[%c9] : memref<16xf32, #tpu.memory_space<smem>>
    %c10 = arith.constant 10 : index
    %10 = memref.load %arg1[%c10] : memref<16xf32, #tpu.memory_space<smem>>
    %c11 = arith.constant 11 : index
    %11 = memref.load %arg1[%c11] : memref<16xf32, #tpu.memory_space<smem>>
    %c12 = arith.constant 12 : index
    %12 = memref.load %arg1[%c12] : memref<16xf32, #tpu.memory_space<smem>>
    %c13 = arith.constant 13 : index
    %13 = memref.load %arg1[%c13] : memref<16xf32, #tpu.memory_space<smem>>
    %c0_0 = arith.constant 0 : index
    %c0_1 = arith.constant 0 : index
    %14 = vector.load %arg0[%c0_0, %c0_1] : memref<1x2xf32, #tpu.memory_space<vmem>>, vector<1x1xf32>
    %c0_2 = arith.constant 0 : index
    %c1_3 = arith.constant 1 : index
    %15 = vector.load %arg0[%c0_2, %c1_3] : memref<1x2xf32, #tpu.memory_space<vmem>>, vector<1x1xf32>
    %16 = vector.broadcast %8 : f32 to vector<1x1xf32>
    %17 = arith.mulf %14, %16 : vector<1x1xf32>
    %18 = vector.broadcast %9 : f32 to vector<1x1xf32>
    %19 = arith.mulf %15, %18 : vector<1x1xf32>
    %20 = arith.addf %17, %19 : vector<1x1xf32>
    %21 = arith.negf %20 : vector<1x1xf32>
    %22 = math.exp %21 : vector<1x1xf32>
    %cst = arith.constant 1.000000e+00 : f32
    %23 = vector.broadcast %cst : f32 to vector<1x1xf32>
    %24 = arith.addf %23, %22 : vector<1x1xf32>
    %25 = arith.divf %23, %24 : vector<1x1xf32>
    %26 = vector.broadcast %0 : f32 to vector<1x1xf32>
    %27 = arith.mulf %26, %14 : vector<1x1xf32>
    %28 = vector.broadcast %1 : f32 to vector<1x1xf32>
    %29 = arith.mulf %28, %15 : vector<1x1xf32>
    %30 = arith.addf %27, %29 : vector<1x1xf32>
    %31 = vector.broadcast %10 : f32 to vector<1x1xf32>
    %32 = arith.subf %30, %31 : vector<1x1xf32>
    %33 = vector.broadcast %2 : f32 to vector<1x1xf32>
    %34 = arith.mulf %33, %14 : vector<1x1xf32>
    %35 = vector.broadcast %3 : f32 to vector<1x1xf32>
    %36 = arith.mulf %35, %15 : vector<1x1xf32>
    %37 = arith.addf %34, %36 : vector<1x1xf32>
    %38 = vector.broadcast %11 : f32 to vector<1x1xf32>
    %39 = arith.subf %37, %38 : vector<1x1xf32>
    %40 = vector.broadcast %4 : f32 to vector<1x1xf32>
    %41 = arith.mulf %40, %14 : vector<1x1xf32>
    %42 = vector.broadcast %5 : f32 to vector<1x1xf32>
    %43 = arith.mulf %42, %15 : vector<1x1xf32>
    %44 = arith.addf %41, %43 : vector<1x1xf32>
    %45 = vector.broadcast %12 : f32 to vector<1x1xf32>
    %46 = arith.addf %44, %45 : vector<1x1xf32>
    %47 = vector.broadcast %6 : f32 to vector<1x1xf32>
    %48 = arith.mulf %47, %14 : vector<1x1xf32>
    %49 = vector.broadcast %7 : f32 to vector<1x1xf32>
    %50 = arith.mulf %49, %15 : vector<1x1xf32>
    %51 = arith.addf %48, %50 : vector<1x1xf32>
    %52 = vector.broadcast %13 : f32 to vector<1x1xf32>
    %53 = arith.addf %51, %52 : vector<1x1xf32>
    %54 = arith.subf %32, %46 : vector<1x1xf32>
    %55 = arith.mulf %25, %54 : vector<1x1xf32>
    %56 = arith.addf %46, %55 : vector<1x1xf32>
    %57 = arith.subf %39, %53 : vector<1x1xf32>
    %58 = arith.mulf %25, %57 : vector<1x1xf32>
    %59 = arith.addf %53, %58 : vector<1x1xf32>
    %60 = tpu.iota {dimensions = array<i32: 1>} : vector<1x128xi32>
    %c0_i32 = arith.constant 0 : i32
    %61 = vector.broadcast %c0_i32 : i32 to vector<1x128xi32>
    %62 = arith.cmpi eq, %60, %61 : vector<1x128xi32>
    %c1_i32 = arith.constant 1 : i32
    %63 = vector.broadcast %c1_i32 : i32 to vector<1x128xi32>
    %64 = arith.cmpi eq, %60, %63 : vector<1x128xi32>
    %cst_4 = arith.constant 0.000000e+00 : f32
    %65 = vector.shape_cast %59 : vector<1x1xf32> to vector<1x1xf32>
    %66 = vector.broadcast %65 : vector<1x1xf32> to vector<1x128xf32>
    %67 = vector.broadcast %cst_4 : f32 to vector<1x128xf32>
    %68 = arith.select %64, %66, %67 : vector<1x128xi1>, vector<1x128xf32>
    %69 = vector.shape_cast %56 : vector<1x1xf32> to vector<1x1xf32>
    %70 = vector.broadcast %69 : vector<1x1xf32> to vector<1x128xf32>
    %71 = arith.select %62, %70, %68 : vector<1x128xi1>, vector<1x128xf32>
    %c0_5 = arith.constant 0 : index
    %c0_6 = arith.constant 0 : index
    %72 = vector.load %arg2[%c0_5, %c0_6] : memref<1x128xf32, #tpu.memory_space<vmem>>, vector<1x128xf32>
    tpu.vector_store %arg2[%c0_5, %c0_6], %71 {strides = array<i32>} : memref<1x128xf32, #tpu.memory_space<vmem>>, vector<1x128xf32>,
    return
  }
}

</mosaic_0001>

<bundles_post_ra>
// kernel: forward.1
= control target key start
LH: loop header
LB: loop body
LE: loop exit
PB: predicated region body
PF: predicated region fallthrough
CT: control target
= control target key end

     0   :  { %7 = vsyncpa [#allocation3], 0  ;;  %s292_s0 = inlined_call_operand.hbm [shape: f32[1,2], index: 0, kind: input, shape index: {}]   ;;  %s293_s1 = inlined_call_operand.vmem [shape: f32[16], index: 1, kind: input, shape index: {}]   ;;  %s294_s2 = inlined_call_operand.hbm [shape: f32[1,128], index: 2, kind: output, shape index: {}]  }
   0x1   :  { %8 = vsyncpa [#allocation5], 0 }
   0x2   :  { %9 = vsyncpa [#allocation4], 0  ;;  %s26_s11 = sshll.u32 %s293_s1, 4  ;;  %s245_s12 = smov [#allocation2]   ;;  %s27_s11 = int_to_ptr.vmem [resolvable:$true] %s26_s11 }
   0x3   :  { %s16_s13 = sshll.u32 %s245_s12, 4  ;;  %s183_s16 = scalar_lea.hbm %s292_s0, 16  ;;  %s17_s13 = int_to_ptr.vmem [resolvable:$true] %s16_s13 }
   0x4   :  { %p184_p0 = scmp.ne.s32.totalorder %s292_s0, %s183_s16  ;;  %p187_p1 = scmp.lt.u32.totalorder %s183_s16, %s292_s0 }
   0x6   :  { %p189_p2 = pnand %p187_p1, %p184_p0 }
   0x8   :  { %192 = shalt.err (!%p189_p2)
}
   0x9   :  { %s193_s21 = scalar_lea.vmem %s17_s13, 16  ;;  %s197_s1 = scalar_lea.vmem %s17_s13, 32 }
   0xa   :  { %p194_p3 = scmp.ne.s32.totalorder %s17_s13, %s193_s21  ;;  %p198_p4 = scmp.lt.s32.totalorder %s17_s13, %s17_s13 }
   0xb   :  { %p199_p5 = scmp.lt.s32.totalorder %s197_s1, %s193_s21 }
   0xd   :  { %p200_p6 = por %p199_p5, %p198_p4 }
   0xf   :  { %p201_p7 = pnand %p200_p6, %p194_p3 }
  0x11   :  { %204 = shalt.err (!%p201_p7)
}
  0x12   :  { %19 = dma.hbm_to_vmem [thread:$0]  %s292_s0, 16, %s17_s13, [#allocation3]  }
  0x13   :  { %s205_s24 = scalar_lea.vmem %s27_s11, 16  ;;  %p210_p9 = scmp.lt.s32.totalorder %s27_s11, %s27_s11 }
  0x14   :  { %p206_p8 = scmp.ne.s32.totalorder %s27_s11, %s205_s24  ;;  %p211_p10 = scmp.lt.s32.totalorder %s205_s24, %s205_s24 }
  0x16   :  { %p212_p11 = por %p211_p10, %p210_p9 }
  0x18   :  { %p213_p12 = pnand %p212_p11, %p206_p8 }
  0x1a   :  { %216 = shalt.err (!%p213_p12)
}
  0x1b   :  { %s246_s25 = smov [#allocation6]  }
  0x1c   :  { %29 = dma.vmem_to_smem %s27_s11, 16, %s246_s25, [#allocation5]  }
  0x1d   :  { %239 = dma.done.wait [#allocation3], 16  }
  0x1e   :  { %240 = vsyncadd [#allocation3], 4294967280 }
  0x1f   :  { %241 = dma.done.wait [#allocation5], 16  }
  0x20   :  { %242 = vsyncadd [#allocation5], 4294967280 }
  0x21   :  { %36 = sfence }
  0x22   :  { %s166_s26 = sld [smem:[#allocation6 + $0x9]]  ;;  %s164_s27 = sld [smem:[#allocation6 + $0x7]]  ;;  %v51_v0 = vld [vmem:[#allocation2] sm:$0x1]  ;;  %v248_v11 = vmov 0   ;;  %v117_v50 = vlaneseq }
  0x23   :  { %s160_s28 = sld [smem:[#allocation6 + $0x3]]  ;;  %s162_s29 = sld [smem:[#allocation6 + $0x5]]  ;;  %178 = vset.pattern.permute.xlu0 %v248_v11  ;;  %177 = vset.pattern.permute.xlu1 %v248_v11 }
  0x24   :  { %s158_s30 = sld [smem:[#allocation6 + $0x1]]  ;;  %s247_s0 = smov 127   ;;  %v127_v51 = vshrl.u32 %v117_v50, 7  ;;  %v118_v52 = vand.u32 127, %v117_v50 }
  0x25   :  { %s165_s3 = sld [smem:[#allocation6 + $0x8]]  ;;  %s161_s4 = sld [smem:[#allocation6 + $0x4]] }
  0x26   :  { %s37_s5 = sld [smem:[#allocation6]]  ;;  %s163_s6 = sld [smem:[#allocation6 + $0x6]]  ;;  %v128_v53 = vsub.s32 0, %v127_v51  ;;  %vm120_vm0 = vcmp.eq.s32.totalorder %v118_v52, 1  ;;  %vm119_vm1 = vcmp.eq.s32.totalorder %v118_v52, 0 }
  0x27   :  { %s159_s7 = sld [smem:[#allocation6 + $0x2]]  ;;  %s169_s8 = sld [smem:[#allocation6 + $0xc]] }
  0x28   :  { %v54_v1 = vstv %s166_s26  ;;  %v102_v3 = vstv %s164_s27  ;;  %s167_s9 = sld [smem:[#allocation6 + $0xa]]  ;;  %s170_s10 = sld [smem:[#allocation6 + $0xd]] }
  0x29   :  { %v55_v2 = vmul.f32 %v54_v1, %v51_v0  ;;  %v80_v4 = vstv %s160_s28  ;;  %v103_v5 = vmul.f32 %v102_v3, %v51_v0  ;;  %v91_v8 = vstv %s162_s29  ;;  %s168_s11 = sld [smem:[#allocation6 + $0xb]]  ;;  %s249_s12 = smov [#allocation7]  }
  0x2a   :  { %v69_v6 = vstv %s158_s30  ;;  %v81_v7 = vmul.f32 %v80_v4, %v51_v0  ;;  %v92_v10 = vmul.f32 %v91_v8, %v51_v0  ;;  %s148_s13 = sshll.u32 %s249_s12, 4  ;;  %s149_s13 = int_to_ptr.vmem [resolvable:$true] %s148_s13 }
  0x2b   :  { %57 = vrot.lane.b32.xlu0 %v55_v2, %s247_s0  ;;  %105 = vrot.lane.b32.xlu1 %v103_v5, %s247_s0  ;;  %v70_v9 = vmul.f32 %v69_v6, %v51_v0  ;;  %v52_v12 = vstv %s165_s3  ;;  %v89_v19 = vstv %s161_s4  ;;  %s217_s14 = scalar_lea.vmem %s149_s13, 16  ;;  %s221_s15 = scalar_lea.vmem %s149_s13, 32 }
  0x2c   :  { %v53_v13 = vmul.f32 %v52_v12, %v51_v0  ;;  %v67_v20 = vstv %s37_s5  ;;  %v100_v21 = vstv %s163_s6  ;;  %v90_v23 = vmul.f32 %v89_v19, %v51_v0  ;;  %p218_p13 = scmp.ne.s32.totalorder %s149_s13, %s217_s14  ;;  %p222_p0 = scmp.lt.s32.totalorder %s149_s13, %s149_s13 }
  0x2d   :  { %v78_v22 = vstv %s159_s7  ;;  %v68_v24 = vmul.f32 %v67_v20, %v51_v0  ;;  %v101_v28 = vmul.f32 %v100_v21, %v51_v0  ;;  %v98_v33 = vstv %s169_s8  ;;  %p223_p1 = scmp.lt.s32.totalorder %s221_s15, %s217_s14 }
  0x2e   :  { %v79_v29 = vmul.f32 %v78_v22, %v51_v0  ;;  %v76_v34 = vstv %s167_s9  ;;  %v109_v37 = vstv %s170_s10 }
  0x2f   :  { %83 = vrot.lane.b32.xlu0 %v81_v7, %s247_s0  ;;  %72 = vrot.lane.b32.xlu1 %v70_v9, %s247_s0  ;;  %v87_v38 = vstv %s168_s11  ;;  %p224_p2 = por %p223_p1, %p222_p0 }
  0x31   :  { %p225_p3 = pnand %p224_p2, %p218_p13 }
  0x33   :  { %94 = vrot.lane.b32.xlu0 %v92_v10, %s247_s0 }
  0x9d   :  { %v58_v14 = vpop.permute.xlu0 %57  ;;  %v106_v17 = vpop.permute.xlu1 %105 }
  0x9e   :  { %v60_v15 = vadd.f32 %v58_v14, %v53_v13  ;;  %v108_v35 = vadd.f32 %v106_v17, %v101_v28 }
  0xa0   :  { %v171_v16 = vmul.f32 -1.442695, %v60_v15  ;;  %v110_v41 = vadd.f32 %v109_v37, %v108_v35 }
  0xa1   :  { %v84_v18 = vpop.permute.xlu0 %83  ;;  %v73_v26 = vpop.permute.xlu1 %72 }
  0xa2   :  { %179 = vpow2.f32 %v171_v16  ;;  %v75_v32 = vadd.f32 %v73_v26, %v68_v24  ;;  %v86_v36 = vadd.f32 %v84_v18, %v79_v29 }
  0xa4   :  { %v77_v40 = vsub.f32 %v75_v32, %v76_v34  ;;  %v88_v42 = vsub.f32 %v86_v36, %v87_v38 }
  0xa5   :  { %v95_v25 = vpop.permute.xlu0 %94 }
  0xa6   :  { %v97_v31 = vadd.f32 %v95_v25, %v90_v23  ;;  %v114_v44 = vsub.f32 %v88_v42, %v110_v41 }
  0xa8   :  { %v99_v39 = vadd.f32 %v98_v33, %v97_v31 }
  0xaa   :  { %v111_v43 = vsub.f32 %v77_v40, %v99_v39 }
  0xac   :  { %v180_v27 = vpop.eup %179 }
  0xad   :  { %v64_v30 = vadd.f32 1.0, %v180_v27 }
  0xaf   :  { %181 = vrcp.f32 %v64_v30 }
  0xb9   :  { %v182_v45 = vpop.eup %181 }
  0xba   :  { %v115_v46 = vmul.f32 %v182_v45, %v114_v44  ;;  %v112_v47 = vmul.f32 %v182_v45, %v111_v43 }
  0xbc   :  { %v116_v48 = vadd.f32 %v115_v46, %v110_v41  ;;  %v113_v49 = vadd.f32 %v112_v47, %v99_v39 }
  0xbe   :  { %123 = vperm.xlu1 %177, %v116_v48   ;;  %133 = vperm.xlu0 %178, %v113_v49  }
 0x13d   :  { %v124_v54 = vpop.permute.xlu1 %123  ;;  %v134_v55 = vpop.permute.xlu0 %133 }
 0x13e   :  { %v129_v56 = vrot.slane %v124_v54, %v128_v53  ;;  %v139_v57 = vrot.slane %v134_v55, %v128_v53 }
 0x140   :  { %v130_v58 = vsel %vm120_vm0, %v129_v56, 0.0 }
 0x141   :  { %v140_v59 = vsel %vm119_vm1, %v139_v57, %v130_v58 }
 0x142   :  { %141 = vst [vmem:[#allocation7] sm:$0x1] %v140_v59 }
 0x143   :  { %228 = shalt.err (!%p225_p3)
}
 0x144   :  { %s229_s18 = scalar_lea.hbm %s294_s2, 16 }
 0x145   :  { %p230_p4 = scmp.ne.s32.totalorder %s294_s2, %s229_s18  ;;  %p233_p5 = scmp.lt.u32.totalorder %s229_s18, %s294_s2 }
 0x147   :  { %p235_p6 = pnand %p233_p5, %p230_p4 }
 0x149   :  { %238 = shalt.err (!%p235_p6)
}
 0x14a   :  { %151 = dma.vmem_to_hbm [thread:$0]  %s149_s13, 16, %s294_s2, [#allocation4]  }
 0x14b   :  { %243 = dma.done.wait [#allocation4], 16  }
 0x14c   :  { %244 = vsyncadd [#allocation4], 4294967280 }
 0x14d   :  { %155 = vsyncpa [#allocation3], 1 }
 0x14e   :  { %156 = vsyncpa [#allocation4], 1 }
 0x14f   :  { %157 = vsyncpa [#allocation5], 1 }

</bundles_post_ra>
